<compile_context>
chip_gen: v7x
topology: tpu7x:2x2x1
jax: 0.10.0
libtpu: 0.0.40
codegen_flags: <defaults>
</compile_context>

<pallas_src>
import functools

import jax
import jax.numpy as jnp
from jax.experimental import pallas as pl
from jax.experimental.pallas import tpu as pltpu

EPS = 1e-5  # nn.InstanceNorm2d default


def _make_kernel(add_activation: bool):
    def conv_in_relu_kernel(p_ref, w_ref, o_ref):
        # p_ref : (1, taps*C_in, HW)      im2col patches (compute dtype)
        # w_ref : (C_out_tile, taps*C_in) conv weights   (compute dtype)
        # o_ref : (1, C_out_tile, HW)     output tile
        hw = o_ref.shape[-1]

        # Single MXU matmul, f32 accumulation.
        acc = jnp.dot(w_ref[...], p_ref[0],
                      preferred_element_type=jnp.float32)      # (C_out_t, HW)

        # InstanceNorm2d (affine=False), one-pass stats over the lane axis.
        inv_hw = jnp.float32(1.0 / hw)
        s1 = jnp.sum(acc, axis=-1, keepdims=True)
        s2 = jnp.sum(acc * acc, axis=-1, keepdims=True)
        mean = s1 * inv_hw
        var = jnp.maximum(s2 * inv_hw - mean * mean, 0.0)
        y = (acc - mean) * jax.lax.rsqrt(var + EPS)

        if add_activation:
            y = jnp.maximum(y, 0.0)

        o_ref[0] = y.astype(o_ref.dtype)

    return conv_in_relu_kernel


def _im2col(x_pad, kh, kw, h_out, w_out, stride):
    """(N, C_in, Hp, Wp) -> (N, kh*kw*C_in, h_out*w_out), tap-major rows."""
    n, c_in = x_pad.shape[:2]
    cols = []
    for i in range(kh):
        for j in range(kw):
            patch = x_pad[:, :,
                          i:i + (h_out - 1) * stride + 1:stride,
                          j:j + (w_out - 1) * stride + 1:stride]
            cols.append(patch.reshape(n, c_in, h_out * w_out))
    return jnp.concatenate(cols, axis=1)


def convolutional_block(x, weight, bias, *, padding=1, stride=1,
                        add_activation=True, compute_dtype=jnp.bfloat16,
                        c_out_tile=None):
    """x: (N, C_in, H, W); weight: (C_out, C_in, KH, KW); bias: (C_out,).

    `bias` is accepted for API parity but intentionally unused: the following
    InstanceNorm2d(affine=False) subtracts the per-channel mean, which cancels
    a per-channel conv bias exactly.
    """
    del bias
    n, c_in, h, w = x.shape
    c_out, _, kh, kw = weight.shape

    # --- XLA glue: reflect pad + im2col (lane-dense patch matrix) -----------
    x_pad = jnp.pad(
        x, ((0, 0), (0, 0), (padding, padding), (padding, padding)),
        mode="reflect")
    h_out = (h + 2 * padding - kh) // stride + 1
    w_out = (w + 2 * padding - kw) // stride + 1
    hw = h_out * w_out
    taps = kh * kw

    patches = _im2col(x_pad, kh, kw, h_out, w_out, stride)       # (N,taps*Cin,HW)
    # Weight columns must match patch row order: (i*kw + j)*C_in + ci.
    w_mat = jnp.transpose(weight, (0, 2, 3, 1)).reshape(c_out, taps * c_in)

    patches_c = patches.astype(compute_dtype)
    w_mat_c = w_mat.astype(compute_dtype)

    # --- C_out tiling (parallel grid axis; IN is per-channel) --------------
    if c_out_tile is None:
        if c_out <= 64:
            c_out_tile = c_out
        else:
            c_out_tile = next((t for t in (64, 32, 16, 8) if c_out % t == 0),
                              c_out)
    assert c_out % c_out_tile == 0

    # --- VMEM budget / cost estimate ----------------------------------------
    item_c = jnp.dtype(compute_dtype).itemsize
    item_o = jnp.dtype(x.dtype).itemsize
    in_blk = taps * c_in * hw * item_c
    w_blk = c_out_tile * taps * c_in * item_c
    out_blk = c_out_tile * hw * item_o
    acc_blk = c_out_tile * hw * 4
    vmem_needed = 2 * (in_blk + w_blk + out_blk) + 2 * acc_blk
    vmem_limit = int(min(max(2 * vmem_needed, 32 * 1024 * 1024),
                         64 * 1024 * 1024))

    cost = pl.CostEstimate(
        flops=2 * n * c_out * taps * c_in * hw + 8 * n * c_out * hw,
        transcendentals=n * c_out,
        bytes_accessed=int(patches_c.size * item_c + w_mat_c.size * item_c
                           + n * c_out * hw * item_o),
    )

    out_flat = pl.pallas_call(
        _make_kernel(add_activation),
        out_shape=jax.ShapeDtypeStruct((n, c_out, hw), x.dtype),
        grid_spec=pltpu.PrefetchScalarGridSpec(
            num_scalar_prefetch=0,
            grid=(n, c_out // c_out_tile),
            in_specs=[
                # patch matrix stays resident across the C_out-tile axis
                pl.BlockSpec((1, taps * c_in, hw), lambda b, co: (b, 0, 0)),
                pl.BlockSpec((c_out_tile, taps * c_in), lambda b, co: (co, 0)),
            ],
            out_specs=pl.BlockSpec((1, c_out_tile, hw),
                                   lambda b, co: (b, co, 0)),
        ),
        compiler_params=pltpu.CompilerParams(
            dimension_semantics=("parallel", "parallel"),
            vmem_limit_bytes=vmem_limit),
        cost_estimate=cost,
    )(patches_c, w_mat_c)

    return out_flat.reshape(n, c_out, h_out, w_out)


def _reference(x, weight, bias, *, padding=1):
    """Pure-JAX reference: reflect-pad conv (+bias) + instance norm + relu."""
    x_pad = jnp.pad(
        x, ((0, 0), (0, 0), (padding, padding), (padding, padding)),
        mode="reflect")
    y = jax.lax.conv_general_dilated(
        x_pad, weight, window_strides=(1, 1), padding="VALID",
        dimension_numbers=("NCHW", "OIHW", "NCHW"))
    y = y + bias.reshape(1, -1, 1, 1)
    mean = jnp.mean(y, axis=(2, 3), keepdims=True)
    var = jnp.mean((y - mean) ** 2, axis=(2, 3), keepdims=True)
    y = (y - mean) * jax.lax.rsqrt(var + EPS)
    return jnp.maximum(y, 0.0)


if __name__ == "__main__":
    key = jax.random.PRNGKey(0)
    k_x, k_w, k_b = jax.random.split(key, 3)

    N, C_IN, C_OUT, H, W, K = 2, 4, 8, 16, 16, 3

    x = jax.random.normal(k_x, (N, C_IN, H, W), dtype=jnp.float32)
    fan_in = C_IN * K * K
    weight = jax.random.normal(k_w, (C_OUT, C_IN, K, K),
                               dtype=jnp.float32) / jnp.sqrt(float(fan_in))
    bias = jax.random.normal(k_b, (C_OUT,), dtype=jnp.float32) * 0.1

    # f32 compute path: exact check against reference.
    out_f32 = convolutional_block(x, weight, bias, padding=1,
                                  compute_dtype=jnp.float32)
    out_f32 = jax.block_until_ready(out_f32)

    # bf16 MXU path (default): relaxed tolerance, IN/ReLU epilogue stays f32.
    out_bf16 = convolutional_block(x, weight, bias, padding=1,
                                   compute_dtype=jnp.bfloat16)
    out_bf16 = jax.block_until_ready(out_bf16)

    ref = _reference(x, weight, bias, padding=1)

    assert out_f32.shape == (N, C_OUT, H, W)
    assert out_bf16.shape == (N, C_OUT, H, W)
    assert jnp.allclose(out_f32, ref, atol=1e-4, rtol=1e-4), \
        "f32 path mismatch vs reference"
    assert jnp.allclose(out_bf16, ref, atol=5e-2, rtol=5e-2), \
        "bf16 path mismatch vs reference"

    print("KERNEL_OK")
</pallas_src>

<mosaic_0001>
module attributes {stable_mosaic.version = 11 : i64} {
  func.func @conv_in_relu_kernel(%arg0: i32, %arg1: i32, %arg2: memref<1x36x256xf32, #tpu.memory_space<vmem>>, %arg3: memref<8x36xf32, #tpu.memory_space<vmem>>, %arg4: memref<1x8x256xf32, #tpu.memory_space<vmem>>) attributes {dimension_semantics = [#tpu.dimension_semantics<parallel>, #tpu.dimension_semantics<parallel>], iteration_bounds = array<i64: 2, 1>, scalar_prefetch = 0 : i64, scratch_operands = 0 : i64, tpu.core_type = #tpu.core_type<tc>, window_params = [{transform_indices = @transform_0, window_bounds = array<i64: 1, 36, 256>}, {transform_indices = @transform_1, window_bounds = array<i64: 8, 36>}, {transform_indices = @transform_2, window_bounds = array<i64: 1, 8, 256>}]} {
    %c0 = arith.constant 0 : index
    %c0_0 = arith.constant 0 : index
    %0 = vector.load %arg3[%c0, %c0_0] : memref<8x36xf32, #tpu.memory_space<vmem>>, vector<8x36xf32>
    %c0_1 = arith.constant 0 : index
    %c0_2 = arith.constant 0 : index
    %c0_3 = arith.constant 0 : index
    %1 = vector.load %arg2[%c0_1, %c0_2, %c0_3] : memref<1x36x256xf32, #tpu.memory_space<vmem>>, vector<1x36x256xf32>
    %2 = vector.shape_cast %1 : vector<1x36x256xf32> to vector<36x256xf32>
    %cst = arith.constant dense<0.000000e+00> : vector<8x256xf32>
    %3 = tpu.matmul %0, %2, %cst {dimension_numbers = #tpu.dot_dimension_numbers<[1], [0], [0], [1], [0, 0, 1, 1], [], []>} : vector<8x36xf32>, vector<36x256xf32>, vector<8x256xf32> -> vector<8x256xf32>
    %cst_4 = arith.constant dense<0.000000e+00> : vector<8xf32>
    %4 = vector.multi_reduction <add>, %3, %cst_4 [1] : vector<8x256xf32> to vector<8xf32>
    %5 = vector.shape_cast %4 : vector<8xf32> to vector<8x1xf32>
    %6 = arith.mulf %3, %3 : vector<8x256xf32>
    %cst_5 = arith.constant dense<0.000000e+00> : vector<8xf32>
    %7 = vector.multi_reduction <add>, %6, %cst_5 [1] : vector<8x256xf32> to vector<8xf32>
    %8 = vector.shape_cast %7 : vector<8xf32> to vector<8x1xf32>
    %cst_6 = arith.constant 3.906250e-03 : f32
    %9 = vector.broadcast %cst_6 : f32 to vector<8x1xf32>
    %10 = arith.mulf %5, %9 : vector<8x1xf32>
    %cst_7 = arith.constant 3.906250e-03 : f32
    %11 = vector.broadcast %cst_7 : f32 to vector<8x1xf32>
    %12 = arith.mulf %8, %11 : vector<8x1xf32>
    %13 = arith.mulf %10, %10 : vector<8x1xf32>
    %14 = arith.subf %12, %13 : vector<8x1xf32>
    %cst_8 = arith.constant 0.000000e+00 : f32
    %15 = vector.broadcast %cst_8 : f32 to vector<8x1xf32>
    %16 = arith.maximumf %14, %15 : vector<8x1xf32>
    %17 = vector.broadcast %10 : vector<8x1xf32> to vector<8x256xf32>
    %18 = arith.subf %3, %17 : vector<8x256xf32>
    %cst_9 = arith.constant 9.99999974E-6 : f32
    %19 = vector.broadcast %cst_9 : f32 to vector<8x1xf32>
    %20 = arith.addf %16, %19 : vector<8x1xf32>
    %21 = math.rsqrt %20 : vector<8x1xf32>
    %22 = vector.broadcast %21 : vector<8x1xf32> to vector<8x256xf32>
    %23 = arith.mulf %18, %22 : vector<8x256xf32>
    %cst_10 = arith.constant 0.000000e+00 : f32
    %24 = vector.broadcast %cst_10 : f32 to vector<8x256xf32>
    %25 = arith.maximumf %23, %24 : vector<8x256xf32>
    %c0_11 = arith.constant 0 : index
    %c0_12 = arith.constant 0 : index
    %c0_13 = arith.constant 0 : index
    %26 = vector.load %arg4[%c0_11, %c0_12, %c0_13] : memref<1x8x256xf32, #tpu.memory_space<vmem>>, vector<1x8x256xf32>
    %27 = vector.shape_cast %26 : vector<1x8x256xf32> to vector<8x256xf32>
    %28 = vector.shape_cast %25 : vector<8x256xf32> to vector<1x8x256xf32>
    tpu.vector_store %arg4[%c0_11, %c0_12, %c0_13], %28 {strides = array<i32>} : memref<1x8x256xf32, #tpu.memory_space<vmem>>, vector<1x8x256xf32>,
    return
  }
  func.func @transform_0(%arg0: i32, %arg1: i32) -> (i32, i32, i32) {
    %c0_i32 = arith.constant 0 : i32
    %c0_i32_0 = arith.constant 0 : i32
    %c0_i32_1 = arith.constant 0 : i32
    return %arg0, %c0_i32, %c0_i32_0 : i32, i32, i32
  }
  func.func @transform_1(%arg0: i32, %arg1: i32) -> (i32, i32) {
    %c0_i32 = arith.constant 0 : i32
    %c0_i32_0 = arith.constant 0 : i32
    return %arg1, %c0_i32 : i32, i32
  }
  func.func @transform_2(%arg0: i32, %arg1: i32) -> (i32, i32, i32) {
    %c0_i32 = arith.constant 0 : i32
    %c0_i32_0 = arith.constant 0 : i32
    return %arg0, %arg1, %c0_i32 : i32, i32, i32
  }
}

</mosaic_0001>

<bundles_post_ra>
// kernel: tpu_custom_call.1
= control target key start
LH: loop header
LB: loop body
LE: loop exit
PB: predicated region body
PF: predicated region fallthrough
CT: control target
= control target key end

     0   :  { %7 = vsyncpa [#allocation3], 0  ;;  %s687_s0 = inlined_call_operand.vmem [shape: f32[2,36,256], index: 0, kind: input, shape index: {}]   ;;  %s688_s1 = inlined_call_operand.vmem [shape: f32[8,36], index: 1, kind: input, shape index: {}]   ;;  %s689_s2 = inlined_call_operand.hbm [shape: f32[2,8,256], index: 2, kind: output, shape index: {}]  }
   0x1   :  { %9 = vsyncpa [#allocation3 + $0x1], 0  ;;  %s572_s9 = smov 0   ;;  %s574_s10 = smov 0  }
   0x2   :  { %s576_s11 = smov 0   ;;  %s578_s12 = smov 0  }
   0x3   :  { %s580_s13 = smov 0   ;;  %s582_s14 = smov 0  }
   0x4 LB: > { %s391_s15 = sadd.s32 4294967295, %s553_s14   ;;  %s392_s16 = sadd.s32 4294967294, %s553_s14   ;;  %s553_s14 = sphi %s582_s14, %s15_s14   ;;  %s549_s13 = sphi %s580_s13, %s696_s13   ;;  %s545_s12 = sphi %s578_s12, %s695_s12   ;;  %s541_s11 = sphi %s576_s11, %s694_s11   ;;  %s537_s10 = sphi %s574_s10, %s693_s10   ;;  %s533_s9 = sphi %s572_s9, %s692_s9  }
   0x5   : > { %s27_s17 = sadd.s32 1, %s549_s13  ;;  %s88_s18 = sadd.s32 1, %s541_s11 }
   0x6   : > { %p29_p0 = scmp.ge.s32.totalorder %s27_s17, 2  ;;  %p98_p1 = scmp.ne.s32.totalorder %s541_s11, %s537_s10 }
   0x7   : > { %p99_p2 = scmp.eq.s32.totalorder %s391_s15, 1  ;;  %p104_p3 = scmp.ne.s32.totalorder %s537_s10, %s533_s9 }
   0x8   : > { %s698_s17 = smov (%p29_p0, %s27_s17), 0  ;;  %p105_p5 = scmp.eq.s32.totalorder %s392_s16, 1 }
   0x9   : > { %p612_p4 = por %p99_p2, %p98_p1  ;;  %s83_s20 = ssub.s32 %s549_s13, %s698_s17 }
   0xa   : > { %p396_p6 = scmp.ge.s32.totalorder %s553_s14, 1  ;;  %p86_p7 = scmp.eq.s32.totalorder %s83_s20, 0 }
   0xb   : > { %p619_p8 = por %p105_p5, %p104_p3  ;;  %p138_p9 = scmp.lt.s32.totalorder %s553_s14, 3 }
   0xc   : > { %s625_s22 = scalar_select %p86_p7, %s541_s11, %s88_s18  }
   0xd   : > { %p139_p10 = pnand %p396_p6, %p138_p9 }
   0xe   : > { %p164_p11 = scmp.lt.s32.totalorder (!%p139_p10), %s545_s12, 1  ;;  %v555_v0 = vmov (!%p139_p10), 0.0   ;;  %vm188_vm0 = vcmask (!%p139_p10), 1043456   ;;  %v173_v15 = vld [vmem:[%s688_s1] sm:$0xff] (!%p139_p10)  ;;  %vm184_vm1 = vcmask (!%p139_p10), 293888   ;;  %s161_s30 = sand.u32 (!%p139_p10), 1, %s537_s10  }
   0xf   : > { %142 = sbr.rel (%p139_p10) target bundleno = 438 (0x1b6), region = 28  ;;  %259 = vmatprep.mubr.f32.mxu0 (!%p139_p10), %v555_v0  ;;  %s397_s3 = sshll.u32 (!%p139_p10), %s161_s30, 4 }
  0x10   : > { %s407_s4 = sshll.u32 (!%p139_p10), %s545_s12, 8  ;;  %s163_s5 = scalar_lea.vmem (!%p139_p10), [#allocation2], %s397_s3 }
  0x11   : > { %s306_s6 = sshll.u32 (!%p139_p10), %s163_s5, 4  ;;  %s640_s15 = scalar_lea.hbm (!%p139_p10), %s689_s2, %s407_s4  ;;  %s642_s6 = int_to_ptr.vmem [resolvable:$true] %s306_s6 }
  0x12   : > { %s290_s16 = scalar_lea.sflag (!%p139_p10), [#allocation3], %s161_s30  ;;  %s556_s18 = smov (!%p139_p10), [#allocation2]  }
  0x13   : > { %s479_s20 = sshll.u32 (!%p139_p10), %s556_s18, 4  ;;  %s480_s20 = int_to_ptr.vmem [resolvable:$false] %s479_s20 }
  0x14   : > { %p482_p1 = scmp.lt.s32.totalorder (!%p139_p10), %s642_s6, %s480_s20 }
  0x16   : > { %s165_s23 = scalar_select %p164_p11, %s545_s12, 1 }
  0x17   : > { %s475_s12 = scalar_lea.vmem %s642_s6, 256 }
  0x18   : > { %s416_s24 = smul.u32 80, %s165_s23  ;;  %p476_p12 = scmp.ne.s32.totalorder %s642_s6, %s475_s12 }
  0x19   : > { %s481_s23 = scalar_lea.vmem %s480_s20, 512 }
  0x1a   : > { %s168_s27 = scalar_lea.vmem %s687_s0, %s416_s24  ;;  %p477_p13 = pnand %p476_p12, %p612_p4 }
  0x1b   : > { %v175_v1 = vld [vmem:[%s168_s27 + $0x8] sm:$0xff]  ;;  %v177_v2 = vld [vmem:[%s168_s27 + $0x18] sm:$0xff]  ;;  %v174_v3 = vld [vmem:[%s168_s27] sm:$0xff]  ;;  %p483_p2 = scmp.lt.s32.totalorder %s481_s23, %s475_s12 }
  0x1c   : > { %v408_v4 = vpack.c.bf16 %v177_v2, %v175_v1  ;;  %v176_v5 = vld [vmem:[%s168_s27 + $0x10] sm:$0xff]  ;;  %v179_v6 = vld [vmem:[%s168_s27 + $0x28] sm:$0xff]  ;;  %v181_v7 = vld [vmem:[%s168_s27 + $0x38] sm:$0xff]  ;;  %p478_p0 = pneg %p477_p13 }
  0x1d   : > { %v410_v8 = vpack.c.bf16 %v176_v5, %v174_v3  ;;  %v412_v9 = vpack.c.bf16 %v181_v7, %v179_v6  ;;  %v178_v10 = vld [vmem:[%s168_s27 + $0x20] sm:$0xff]  ;;  %v180_v11 = vld [vmem:[%s168_s27 + $0x30] sm:$0xff]  ;;  %v183_v13 = vld [vmem:[%s168_s27 + $0x48] sm:$0xf]  ;;  %p484_p3 = por %p483_p2, %p482_p1 }
  0x1e   : > { %409 = vmatprep.subr.bf16.mxu0 %v408_v4  ;;  %v414_v12 = vpack.c.bf16 %v180_v11, %v178_v10  ;;  %v182_v14 = vld [vmem:[%s168_s27 + $0x40] sm:$0xf] }
  0x1f   : > { %411 = vmatpush1.bf16.msra.mxu0 %v410_v8  ;;  %p485_p5 = pnand %p484_p3, %p478_p0 }
  0x20   : > { %413 = vmatprep.subr.bf16.mxu0 %v412_v9 }
  0x23   : > { %415 = vmatpush1.bf16.msra.mxu0 %v414_v12 }
  0x24   : > { %399 = vmatprep.subr.msk.mxu0 %vm188_vm0, %v183_v13 }
  0x27   : > { %400 = vmatpush1.msk.msra.mxu0 %vm188_vm0, %v182_v14 }
  0x28   : > { %401 = vmatmul.mubr.msk.f32.vlgmr.msra.gmra.mrb[0].mxu0 %vm184_vm1, %v173_v15 }
  0xfb   : > { %v261_v16 = vpop.f32.mrb[0].mxu0 }
  0xfc   : > { %v263_v17 = vpop.f32.mrb[1].mxu0  ;;  %v269_v18 = vmul.f32 %v261_v16, %v261_v16 }
  0xfd   : > { %v270_v19 = vmul.f32 %v263_v17, %v263_v17  ;;  %v266_v20 = vadd.f32 %v263_v17, %v261_v16 }
  0xff   : > { %267 = vadd.xlane.f32.xlu0 %v266_v20  ;;  %v271_v21 = vadd.f32 %v270_v19, %v269_v18 }
 0x103   : > { %272 = vadd.xlane.f32.xlu0 %v271_v21 }
 0x18c   : > { %v268_v22 = vpop.xlane.xlu0 %267 }
 0x18d   : > { %v274_v23 = vmul.f32 0.00390625, %v268_v22 }
 0x18f   : > { %v276_v25 = vmul.f32 %v274_v23, %v274_v23  ;;  %v279_v30 = vsub.f32 %v261_v16, %v274_v23  ;;  %v280_v31 = vsub.f32 %v263_v17, %v274_v23 }
 0x190   : > { %v273_v24 = vpop.xlane.xlu0 %272 }
 0x191   : > { %v275_v26 = vmul.f32 0.00390625, %v273_v24 }
 0x193   : > { %v277_v27 = vsub.f32 %v275_v26, %v276_v25 }
 0x195   : > { %v278_v28 = vmax.f32 %v277_v27, 0.0 }
 0x197   : > { %v281_v29 = vadd.f32 1e-05, %v278_v28 }
 0x199   : > { %473 = vrsqrt.f32 %v281_v29 }
 0x1a3   : > { %v474_v32 = vpop.eup %473 }
 0x1a4   : > { %v283_v33 = vmul.f32 %v474_v32, %v279_v30  ;;  %v284_v34 = vmul.f32 %v474_v32, %v280_v31 }
 0x1a6   : > { %v285_v35 = vmax.f32 %v283_v33, 0.0  ;;  %v286_v36 = vmax.f32 %v284_v34, 0.0 }
 0x1a8   : > { %287 = vst [vmem:[%s163_s5] sm:$0xff] %v285_v35  ;;  %288 = vst [vmem:[%s163_s5 + $0x8] sm:$0xff] %v286_v36 }
 0x1a9   : > { %488 = shalt.err (!%p485_p5)
}
 0x1aa   : > { %s489_s24 = scalar_lea.hbm %s640_s15, 256  ;;  %s493_s27 = scalar_lea.hbm %s689_s2, 512 }
 0x1ab   : > { %p490_p6 = scmp.ne.s32.totalorder %s640_s15, %s489_s24  ;;  %p494_p10 = scmp.lt.u32.totalorder %s640_s15, %s689_s2 }
 0x1ac   : > { %p495_p11 = scmp.lt.u32.totalorder %s493_s27, %s489_s24  ;;  %p497_p13 = scmp.lt.u32.totalorder %s489_s24, %s640_s15 }
 0x1ad   : > { %p491_p7 = pnand %p490_p6, %p612_p4 }
 0x1ae   : > { %p496_p12 = por %p495_p11, %p494_p10 }
 0x1af   : > { %p492_p9 = pneg %p491_p7 }
 0x1b0   : > { %p498_p0 = por %p497_p13, %p496_p12 }
 0x1b2   : > { %p499_p1 = pnand %p498_p0, %p492_p9 }
 0x1b4   : > { %502 = shalt.err (!%p499_p1)
}
 0x1b5   : > { %417 = dma.vmem_to_hbm [thread:$0]  (%p612_p4), %s642_s6, 256, %s640_s15, %s290_s16  }
 0x1b6 PF: > { %p423_p2 = scmp.ge.s32.totalorder %s553_s14, 2  ;;  %s318_s30 = sand.u32 1, %s533_s9  }
 0x1b7   : > { %s319_s3 = scalar_lea.sflag [#allocation3], %s318_s30 }
 0x1b8   : > { %p420_p3 = pnand %p423_p2, %p619_p8 }
 0x1ba   : > { %528 = dma.done.wait (!%p420_p3), %s319_s3, 256  }
 0x1bb   : > { %530 = vsyncadd (!%p420_p3), %s319_s3, 4294967040  ;;  %s15_s14 = sadd.s32 1, %s553_s14   ;;  %s692_s9 = smov %s537_s10 }
 0x1bc   : > { %p12_p5 = scmp.ge.s32.totalorder %s15_s14, 4   ;;  %s693_s10 = smov %s541_s11 }
 0x1bd   : > { %s694_s11 = smov %s625_s22  ;;  %s695_s12 = smov %s549_s13 }
 0x1be   : > { %s696_s13 = smov %s698_s17  ;;  %14 = sbr.rel (!%p12_p5) target bundleno = 4 (0x4), region = 66 }
 0x1c5   :  { %324 = vsyncpa [#allocation3], 1 }
 0x1c6   :  { %326 = vsyncpa [#allocation3 + $0x1], 1 }

</bundles_post_ra>
